<compile_context>
chip_gen: v7x
topology: tpu7x:2x2x1
jax: 0.10.0
libtpu: 0.0.40
codegen_flags: <defaults>
</compile_context>

<pallas_src>
import functools

import jax
import jax.numpy as jnp
from jax import lax
from jax.experimental import pallas as pl
from jax.experimental.pallas import tpu as pltpu


def _retain_kernel(beta_ref, alpha_ref, embed_ref,
                   wbt_ref, bb_ref, wa_ref, ltri_ref, ba_ref,
                   out_ref, *, mix_dtype):
    bt, s, h = beta_ref.shape
    e = embed_ref.shape[-1]

    # ---- beta path: ONE fused MXU matmul over all Bt*S rows (S padded to sublane) ----
    db2 = beta_ref[...].reshape(bt * s, h)                       # free: s % sublane == 0
    beta_w = jnp.tanh(
        jnp.dot(db2, wbt_ref[...], preferred_element_type=jnp.float32)
        + bb_ref[...]
    ).reshape(bt, s, e)                                          # (Bt, S, E) f32

    # ---- alpha path: Linear(H->1) as a VPU multiply + lane reduction (f32) ----
    da = alpha_ref[...].astype(jnp.float32)                      # (Bt, S, H)
    corr = jnp.sum(da * wa_ref[...], axis=-1) + ba_ref[0]        # (Bt, S)

    # Max-shifted exp; epsilon rescaled by exp(-m) (clamped) so the final ratio equals
    # the module's  sum(exp(corr)*mask) + 1e-10  denominator.
    m = jnp.max(corr, axis=-1, keepdims=True)                    # (Bt, 1)
    ev = jnp.exp(corr - m)                                       # (Bt, S)
    eps = 1e-10 * jnp.exp(jnp.minimum(-m, 80.0))                 # (Bt, 1), overflow-safe

    ltri = ltri_ref[...]                                         # (S, S) lower-tri ones
    ev_m = ev.astype(mix_dtype)

    # denom[b,i] = sum_{j<=i} ev[b,j]  ==  ev @ L^T  — one small MXU matmul, batch in M.
    denom = lax.dot_general(
        ev_m, ltri,
        dimension_numbers=(((1,), (1,)), ((), ())),
        preferred_element_type=jnp.float32) + eps                # (Bt, S)
    approx = (jnp.dtype(mix_dtype) != jnp.dtype(jnp.float32))
    inv = pl.reciprocal(denom, approx=approx)                    # (Bt, S)

    # Values: beta_w ⊙ embed, pre-scaled by ev (all O(Bt*S*E) VPU work, no S^2 tensor).
    val = beta_w * embed_ref[...].astype(jnp.float32)            # (Bt, S, E) f32
    wm = (ev[:, :, None] * val).astype(mix_dtype)                # (Bt, S, E)

    # Causal prefix-weighted sums: out_un[b] = L @ wm[b]  (shared L, MXU, f32 acc).
    # Static unrolled loop over the (small, capped) batch tile keeps every matmul a
    # plain relayout-free 2-D MXU call.
    for b in range(bt):
        out_b = jnp.dot(ltri, wm[b], preferred_element_type=jnp.float32)   # (S, E)
        out_ref[b] = (out_b * inv[b, :, None]).astype(out_ref.dtype)


def _vmem_capacity_bytes():
    """Physical VMEM of the current generation (128 MiB v5e/v6e, 64 MiB v7x/TC)."""
    try:
        info = pltpu.get_tpu_info()
        cap = int(getattr(info, "vmem_capacity_bytes", 0))
        if cap > 0:
            return cap
    except Exception:
        pass
    return 64 * 1024 * 1024   # conservative fallback (v7x per-TensorCore)


def _per_batch_vmem(S, H, E, in_isz, out_isz, mix_isz):
    return (2 * (2 * S * H + S * E) * in_isz    # double-buffered input blocks
            + 2 * S * E * out_isz               # double-buffered output block
            + (S * H + 3 * S * E) * 4           # f32 in-kernel intermediates
            + S * E * mix_isz)                  # mix-dtype copy of the values


def _choose_block_batch(B, S, H, E, in_isz, out_isz, mix_isz, budget):
    """Pick (Bt, grid) without requiring Bt | B; keep >=2 grid steps when B >= 2."""
    per_b = _per_batch_vmem(S, H, E, in_isz, out_isz, mix_isz)
    fixed = 2 * (H * E * in_isz + (E + H) * 4 + S * S * mix_isz) + (1 << 20)
    avail = max(budget - fixed, per_b)
    bt = max(1, min(B, avail // per_b))
    if B >= 2:
        bt = min(bt, -(-B // 2))                # >= 2 grid steps (v7x has 2 TCs)
    bt = max(1, min(bt, 32, max(1, 2048 // S)))  # bound unroll / beta-matmul M
    grid = -(-B // bt)
    bt = -(-B // grid)                           # rebalance -> minimal batch padding
    return int(bt), int(grid)


def retain_attention(data_alpha, data_beta, data_embed, params, *,
                     compute_dtype=jnp.float32,
                     mix_dtype=jnp.bfloat16,
                     out_dtype=jnp.float32):
    """params: dict with Wb (E,H), bb (E,), wa (1,H), ba (1,).

    compute_dtype: storage/MXU dtype for the streamed tensors and Wb (bf16 halves DMA
      traffic on v5e/v6e/v7x; elementwise math stays f32).
    mix_dtype: dtype fed to the causal-mix / denominator MXU matmuls (bf16 default for
      full MXU rate; the lower-triangular constant is exact in bf16).  Use f32 for
      bit-faithful module numerics.
    out_dtype: output storage dtype (bf16 halves writeback DMA if downstream allows).
    """
    B, S, H = data_beta.shape
    E = data_embed.shape[-1]
    compute_dtype = jnp.dtype(compute_dtype)
    mix_dtype = jnp.dtype(mix_dtype)
    out_dtype = jnp.dtype(out_dtype)
    in_isz, out_isz, mix_isz = (compute_dtype.itemsize, out_dtype.itemsize,
                                mix_dtype.itemsize)

    # Pad S to the sublane multiple so the (Bt,S,H)->(Bt*S,H) reshape is a free view.
    sub = 16 if in_isz == 2 else 8
    S_pad = -(-S // sub) * sub

    phys = _vmem_capacity_bytes()
    budget = int(phys * 0.4)            # working-set target (~51 MiB v5e/v6e, ~25 MiB v7x)
    bt, grid_b = _choose_block_batch(B, S_pad, H, E, in_isz, out_isz, mix_isz, budget)
    B_pad = bt * grid_b

    def pad_bs(x):
        pb, ps = B_pad - x.shape[0], S_pad - x.shape[1]
        if pb == 0 and ps == 0:
            return x
        return jnp.pad(x, ((0, pb), (0, ps), (0, 0)))

    # Streamed tensors in compute dtype; biases / wa / softmax math stay f32.
    db = pad_bs(data_beta.astype(compute_dtype))
    da = pad_bs(data_alpha.astype(compute_dtype))
    de = pad_bs(data_embed.astype(compute_dtype))
    wbt = params["Wb"].T.astype(compute_dtype)                # (H, E)
    bb = params["bb"].reshape(1, E).astype(jnp.float32)       # (1, E)
    wa = params["wa"].reshape(1, H).astype(jnp.float32)       # (1, H)
    ba = params["ba"].reshape(1).astype(jnp.float32)          # (1,)  SMEM scalar
    # Shared causal lower-triangular ones matrix (exact in bf16), fetched once.
    ltri = (jnp.arange(S_pad)[:, None] >= jnp.arange(S_pad)[None, :]).astype(mix_dtype)

    # Generation-aware VMEM limit with headroom.
    est = (bt * _per_batch_vmem(S_pad, H, E, in_isz, out_isz, mix_isz)
           + 2 * (H * E * in_isz + (E + H) * 4 + S_pad * S_pad * mix_isz))
    vmem_limit = int(min(int(phys * 0.85),
                         max(32 * 1024 * 1024, est + est // 4 + (4 << 20))))

    grid_spec = pltpu.PrefetchScalarGridSpec(
        num_scalar_prefetch=0,
        grid=(grid_b,),
        in_specs=[
            pl.BlockSpec((bt, S_pad, H), lambda b: (b, 0, 0)),      # data_beta
            pl.BlockSpec((bt, S_pad, H), lambda b: (b, 0, 0)),      # data_alpha
            pl.BlockSpec((bt, S_pad, E), lambda b: (b, 0, 0)),      # data_embed
            pl.BlockSpec((H, E), lambda b: (0, 0)),                 # Wb^T (fetched once)
            pl.BlockSpec((1, E), lambda b: (0, 0)),                 # bb
            pl.BlockSpec((1, H), lambda b: (0, 0)),                 # wa row
            pl.BlockSpec((S_pad, S_pad), lambda b: (0, 0)),         # L (fetched once)
            pl.BlockSpec(memory_space=pltpu.MemorySpace.SMEM),      # ba scalar
        ],
        out_specs=pl.BlockSpec((bt, S_pad, E), lambda b: (b, 0, 0)),
    )

    out_full = pl.pallas_call(
        functools.partial(_retain_kernel, mix_dtype=mix_dtype),
        out_shape=jax.ShapeDtypeStruct((B_pad, S_pad, E), out_dtype),
        grid_spec=grid_spec,
        compiler_params=pltpu.CompilerParams(
            dimension_semantics=("parallel",),
            vmem_limit_bytes=vmem_limit),
    )(db, da, de, wbt, bb, wa, ltri, ba)

    return out_full[:B, :S, :]


def retain_attention_ref(data_alpha, data_beta, data_embed, params):
    """Pure-JAX reference mirroring the PyTorch forward, for validation."""
    B, S, H = data_beta.shape
    E = data_embed.shape[-1]
    beta_w = jnp.tanh(data_beta.reshape(-1, H) @ params["Wb"].T + params["bb"])
    beta_w = beta_w.reshape(B, S, E)
    corr = (data_alpha.reshape(-1, H) @ params["wa"].T + params["ba"]).reshape(B, S)[:, None, :]
    ev = jnp.exp(corr)                                        # (B, 1, S)
    mask = jnp.triu(jnp.ones((S, S))).T[None]                 # (1, S, S), lower-tri
    acc = jnp.sum(ev * mask, -1)[..., None] + 1e-10
    alpha_w = (ev * mask) / acc                               # (B, S, S)
    mix = beta_w[:, None] * alpha_w[..., None]                # (B, S, S, E)
    return jnp.sum(mix * data_embed[:, None], axis=-2)        # (B, S, E)


if __name__ == "__main__":
    B, S, H, E = 2, 8, 32, 32
    key = jax.random.PRNGKey(0)
    k1, k2, k3, k4, k5, k6, k7 = jax.random.split(key, 7)

    data_alpha = jax.random.normal(k1, (B, S, H), dtype=jnp.float32)
    data_beta = jax.random.normal(k2, (B, S, H), dtype=jnp.float32)
    data_embed = jax.random.normal(k3, (B, S, E), dtype=jnp.float32)

    # Deterministic synthetic parameters (shapes per nn.Linear in __init__).
    params = {
        "Wb": 0.1 * jax.random.normal(k4, (E, H), dtype=jnp.float32),   # attn_beta.weight
        "bb": 0.1 * jax.random.normal(k5, (E,), dtype=jnp.float32),     # attn_beta.bias
        "wa": 0.1 * jax.random.normal(k6, (1, H), dtype=jnp.float32),   # attn_alpha.weight
        "ba": 0.1 * jax.random.normal(k7, (1,), dtype=jnp.float32),     # attn_alpha.bias
    }

    ref = retain_attention_ref(data_alpha, data_beta, data_embed, params)

    # Exact path (f32 storage + f32 mix matmul): faithful module numerics.
    out_exact = retain_attention(data_alpha, data_beta, data_embed, params,
                                 compute_dtype=jnp.float32, mix_dtype=jnp.float32)
    jax.block_until_ready(out_exact)
    assert out_exact.shape == (B, S, E)
    assert jnp.allclose(out_exact, ref, atol=1e-5, rtol=1e-5), "f32 mismatch vs reference"

    # Default fast path: f32 storage, bf16 MXU mix matmul (f32 accumulation).
    out_fast = retain_attention(data_alpha, data_beta, data_embed, params)
    jax.block_until_ready(out_fast)
    assert jnp.allclose(out_fast, ref, atol=3e-2, rtol=3e-2), "bf16-mix mismatch vs reference"

    # bf16 storage path (halves streamed DMA on v5e/v6e/v7x); elementwise math stays f32.
    out_bf16 = retain_attention(data_alpha, data_beta, data_embed, params,
                                compute_dtype=jnp.bfloat16)
    jax.block_until_ready(out_bf16)
    assert jnp.allclose(out_bf16, ref, atol=5e-2, rtol=5e-2), "bf16 mismatch vs reference"

    # Ragged shapes: exercise the batch / seq padding paths (B=3, S=7).
    B2, S2 = 3, 7
    da2 = jax.random.normal(k1, (B2, S2, H), dtype=jnp.float32)
    db2 = jax.random.normal(k2, (B2, S2, H), dtype=jnp.float32)
    de2 = jax.random.normal(k3, (B2, S2, E), dtype=jnp.float32)
    ref2 = retain_attention_ref(da2, db2, de2, params)
    out2 = retain_attention(da2, db2, de2, params,
                            compute_dtype=jnp.float32, mix_dtype=jnp.float32)
    jax.block_until_ready(out2)
    assert out2.shape == (B2, S2, E)
    assert jnp.allclose(out2, ref2, atol=1e-5, rtol=1e-5), "padded-shape mismatch vs reference"

    print("KERNEL_OK")
</pallas_src>

<mosaic_0001>
module attributes {stable_mosaic.version = 11 : i64} {
  func.func @_retain_kernel(%arg0: i32, %arg1: memref<1x8x32xf32, #tpu.memory_space<vmem>>, %arg2: memref<1x8x32xf32, #tpu.memory_space<vmem>>, %arg3: memref<1x8x32xf32, #tpu.memory_space<vmem>>, %arg4: memref<32x32xf32, #tpu.memory_space<vmem>>, %arg5: memref<1x32xf32, #tpu.memory_space<vmem>>, %arg6: memref<1x32xf32, #tpu.memory_space<vmem>>, %arg7: memref<8x8xf32, #tpu.memory_space<vmem>>, %arg8: memref<1xf32, #tpu.memory_space<smem>>, %arg9: memref<1x8x32xf32, #tpu.memory_space<vmem>>) attributes {dimension_semantics = [#tpu.dimension_semantics<parallel>], iteration_bounds = array<i64: 2>, scalar_prefetch = 0 : i64, scratch_operands = 0 : i64, tpu.core_type = #tpu.core_type<tc>, window_params = [{transform_indices = @transform_0, window_bounds = array<i64: 1, 8, 32>}, {transform_indices = @transform_1, window_bounds = array<i64: 1, 8, 32>}, {transform_indices = @transform_2, window_bounds = array<i64: 1, 8, 32>}, {pipeline_mode = #tpu.pipeline_mode<synchronous>, transform_indices = @transform_3, window_bounds = array<i64: 32, 32>}, {pipeline_mode = #tpu.pipeline_mode<synchronous>, transform_indices = @transform_4, window_bounds = array<i64: 1, 32>}, {pipeline_mode = #tpu.pipeline_mode<synchronous>, transform_indices = @transform_5, window_bounds = array<i64: 1, 32>}, {pipeline_mode = #tpu.pipeline_mode<synchronous>, transform_indices = @transform_6, window_bounds = array<i64: 8, 8>}, {transform_indices = @transform_7, window_bounds = array<i64: 1>}, {transform_indices = @transform_8, window_bounds = array<i64: 1, 8, 32>}]} {
    %c0 = arith.constant 0 : index
    %c0_0 = arith.constant 0 : index
    %c0_1 = arith.constant 0 : index
    %0 = vector.load %arg1[%c0, %c0_0, %c0_1] : memref<1x8x32xf32, #tpu.memory_space<vmem>>, vector<1x8x32xf32>
    %1 = vector.shape_cast %0 : vector<1x8x32xf32> to vector<8x32xf32>
    %c0_2 = arith.constant 0 : index
    %c0_3 = arith.constant 0 : index
    %2 = vector.load %arg4[%c0_2, %c0_3] : memref<32x32xf32, #tpu.memory_space<vmem>>, vector<32x32xf32>
    %cst = arith.constant dense<0.000000e+00> : vector<8x32xf32>
    %3 = tpu.matmul %1, %2, %cst {dimension_numbers = #tpu.dot_dimension_numbers<[1], [0], [0], [1], [0, 0, 1, 1], [], []>} : vector<8x32xf32>, vector<32x32xf32>, vector<8x32xf32> -> vector<8x32xf32>
    %c0_4 = arith.constant 0 : index
    %c0_5 = arith.constant 0 : index
    %4 = vector.load %arg5[%c0_4, %c0_5] : memref<1x32xf32, #tpu.memory_space<vmem>>, vector<1x32xf32>
    %5 = vector.broadcast %4 : vector<1x32xf32> to vector<8x32xf32>
    %6 = arith.addf %3, %5 : vector<8x32xf32>
    %7 = math.tanh %6 : vector<8x32xf32>
    %8 = vector.shape_cast %7 : vector<8x32xf32> to vector<1x8x32xf32>
    %c0_6 = arith.constant 0 : index
    %c0_7 = arith.constant 0 : index
    %c0_8 = arith.constant 0 : index
    %9 = vector.load %arg2[%c0_6, %c0_7, %c0_8] : memref<1x8x32xf32, #tpu.memory_space<vmem>>, vector<1x8x32xf32>
    %c0_9 = arith.constant 0 : index
    %c0_10 = arith.constant 0 : index
    %10 = vector.load %arg6[%c0_9, %c0_10] : memref<1x32xf32, #tpu.memory_space<vmem>>, vector<1x32xf32>
    %11 = vector.shape_cast %10 : vector<1x32xf32> to vector<1x1x32xf32>
    %12 = vector.broadcast %11 : vector<1x1x32xf32> to vector<1x8x32xf32>
    %13 = arith.mulf %9, %12 : vector<1x8x32xf32>
    %cst_11 = arith.constant dense<0.000000e+00> : vector<1x8xf32>
    %14 = vector.multi_reduction <add>, %13, %cst_11 [2] : vector<1x8x32xf32> to vector<1x8xf32>
    %c0_12 = arith.constant 0 : index
    %15 = memref.load %arg8[%c0_12] : memref<1xf32, #tpu.memory_space<smem>>
    %16 = vector.broadcast %15 : f32 to vector<1x8xf32>
    %17 = arith.addf %14, %16 : vector<1x8xf32>
    %cst_13 = arith.constant dense<0xFF800000> : vector<1xf32>
    %18 = vector.multi_reduction <maximumf>, %17, %cst_13 [1] : vector<1x8xf32> to vector<1xf32>
    %19 = vector.shape_cast %18 : vector<1xf32> to vector<1x1xf32>
    %20 = vector.broadcast %19 : vector<1x1xf32> to vector<1x8xf32>
    %21 = arith.subf %17, %20 : vector<1x8xf32>
    %22 = math.exp %21 : vector<1x8xf32>
    %cst_14 = arith.constant 0.000000e+00 : f32
    %23 = vector.broadcast %cst_14 : f32 to vector<1x1xf32>
    %24 = arith.subf %23, %19 : vector<1x1xf32>
    %cst_15 = arith.constant 8.000000e+01 : f32
    %25 = vector.broadcast %cst_15 : f32 to vector<1x1xf32>
    %26 = arith.minimumf %24, %25 : vector<1x1xf32>
    %27 = math.exp %26 : vector<1x1xf32>
    %cst_16 = arith.constant 1.000000e-10 : f32
    %28 = vector.broadcast %cst_16 : f32 to vector<1x1xf32>
    %29 = arith.mulf %28, %27 : vector<1x1xf32>
    %c0_17 = arith.constant 0 : index
    %c0_18 = arith.constant 0 : index
    %30 = vector.load %arg7[%c0_17, %c0_18] : memref<8x8xf32, #tpu.memory_space<vmem>>, vector<8x8xf32>
    %cst_19 = arith.constant dense<0.000000e+00> : vector<1x8xf32>
    %31 = tpu.matmul %22, %30, %cst_19 {dimension_numbers = #tpu.dot_dimension_numbers<[1], [1], [0], [0], [0, 0, 1, 0], [], []>} : vector<1x8xf32>, vector<8x8xf32>, vector<1x8xf32> -> vector<1x8xf32>
    %32 = vector.broadcast %29 : vector<1x1xf32> to vector<1x8xf32>
    %33 = arith.addf %31, %32 : vector<1x8xf32>
    %34 = tpu.reciprocal %33 : vector<1x8xf32> -> vector<1x8xf32>
    %c0_20 = arith.constant 0 : index
    %c0_21 = arith.constant 0 : index
    %c0_22 = arith.constant 0 : index
    %35 = vector.load %arg3[%c0_20, %c0_21, %c0_22] : memref<1x8x32xf32, #tpu.memory_space<vmem>>, vector<1x8x32xf32>
    %36 = arith.mulf %8, %35 : vector<1x8x32xf32>
    %37 = vector.shape_cast %22 : vector<1x8xf32> to vector<1x8x1xf32>
    %38 = vector.broadcast %37 : vector<1x8x1xf32> to vector<1x8x32xf32>
    %39 = arith.mulf %38, %36 : vector<1x8x32xf32>
    %40 = vector.shape_cast %39 : vector<1x8x32xf32> to vector<8x32xf32>
    %cst_23 = arith.constant dense<0.000000e+00> : vector<8x32xf32>
    %41 = tpu.matmul %30, %40, %cst_23 {dimension_numbers = #tpu.dot_dimension_numbers<[1], [0], [0], [1], [0, 0, 1, 1], [], []>} : vector<8x8xf32>, vector<8x32xf32>, vector<8x32xf32> -> vector<8x32xf32>
    %42 = vector.shape_cast %34 : vector<1x8xf32> to vector<8xf32>
    %43 = vector.shape_cast %42 : vector<8xf32> to vector<8x1xf32>
    %44 = vector.broadcast %43 : vector<8x1xf32> to vector<8x32xf32>
    %45 = arith.mulf %41, %44 : vector<8x32xf32>
    %c0_24 = arith.constant 0 : index
    %c0_25 = arith.constant 0 : index
    %c0_26 = arith.constant 0 : index
    %46 = vector.load %arg9[%c0_24, %c0_25, %c0_26] : memref<1x8x32xf32, #tpu.memory_space<vmem>>, vector<1x8x32xf32>
    %47 = vector.shape_cast %46 : vector<1x8x32xf32> to vector<8x32xf32>
    %48 = vector.shape_cast %45 : vector<8x32xf32> to vector<1x8x32xf32>
    tpu.vector_store %arg9[%c0_24, %c0_25, %c0_26], %48 {strides = array<i32>} : memref<1x8x32xf32, #tpu.memory_space<vmem>>, vector<1x8x32xf32>,
    return
  }
  func.func @transform_0(%arg0: i32) -> (i32, i32, i32) {
    %c0_i32 = arith.constant 0 : i32
    %c0_i32_0 = arith.constant 0 : i32
    %c0_i32_1 = arith.constant 0 : i32
    return %arg0, %c0_i32, %c0_i32_0 : i32, i32, i32
  }
  func.func @transform_1(%arg0: i32) -> (i32, i32, i32) {
    %c0_i32 = arith.constant 0 : i32
    %c0_i32_0 = arith.constant 0 : i32
    %c0_i32_1 = arith.constant 0 : i32
    return %arg0, %c0_i32, %c0_i32_0 : i32, i32, i32
  }
  func.func @transform_2(%arg0: i32) -> (i32, i32, i32) {
    %c0_i32 = arith.constant 0 : i32
    %c0_i32_0 = arith.constant 0 : i32
    %c0_i32_1 = arith.constant 0 : i32
    return %arg0, %c0_i32, %c0_i32_0 : i32, i32, i32
  }
  func.func @transform_3(%arg0: i32) -> (i32, i32) {
    %c0_i32 = arith.constant 0 : i32
    %c0_i32_0 = arith.constant 0 : i32
    %c0_i32_1 = arith.constant 0 : i32
    return %c0_i32, %c0_i32_0 : i32, i32
  }
  func.func @transform_4(%arg0: i32) -> (i32, i32) {
    %c0_i32 = arith.constant 0 : i32
    %c0_i32_0 = arith.constant 0 : i32
    %c0_i32_1 = arith.constant 0 : i32
    return %c0_i32, %c0_i32_0 : i32, i32
  }
  func.func @transform_5(%arg0: i32) -> (i32, i32) {
    %c0_i32 = arith.constant 0 : i32
    %c0_i32_0 = arith.constant 0 : i32
    %c0_i32_1 = arith.constant 0 : i32
    return %c0_i32, %c0_i32_0 : i32, i32
  }
  func.func @transform_6(%arg0: i32) -> (i32, i32) {
    %c0_i32 = arith.constant 0 : i32
    %c0_i32_0 = arith.constant 0 : i32
    %c0_i32_1 = arith.constant 0 : i32
    return %c0_i32, %c0_i32_0 : i32, i32
  }
  func.func @transform_7(%arg0: i32) -> i32 {
    %c0_i32 = arith.constant 0 : i32
    %c0_i32_0 = arith.constant 0 : i32
    return %c0_i32 : i32
  }
  func.func @transform_8(%arg0: i32) -> (i32, i32, i32) {
    %c0_i32 = arith.constant 0 : i32
    %c0_i32_0 = arith.constant 0 : i32
    %c0_i32_1 = arith.constant 0 : i32
    return %arg0, %c0_i32, %c0_i32_0 : i32, i32, i32
  }
}

</mosaic_0001>

<bundles_post_ra>
// kernel: tpu_custom_call.1
= control target key start
LH: loop header
LB: loop body
LE: loop exit
PB: predicated region body
PF: predicated region fallthrough
CT: control target
= control target key end

     0   :  { %s1526_s0 = inlined_call_operand.hbm [shape: f32[2,8,32], index: 0, kind: input, shape index: {}]   ;;  %s1527_s1 = inlined_call_operand.hbm [shape: f32[2,8,32], index: 1, kind: input, shape index: {}]   ;;  %s1528_s2 = inlined_call_operand.hbm [shape: f32[2,8,32], index: 2, kind: input, shape index: {}]   ;;  %s1529_s3 = inlined_call_operand.hbm [shape: f32[32,32], index: 3, kind: input, shape index: {}]   ;;  %s1530_s4 = inlined_call_operand.vmem [shape: f32[1,32], index: 4, kind: input, shape index: {}]   ;;  %s1531_s5 = inlined_call_operand.vmem [shape: f32[1,32], index: 5, kind: input, shape index: {}]   ;;  %s1532_s6 = inlined_call_operand.vmem [shape: f32[8,8], index: 6, kind: input, shape index: {}]   ;;  %s1533_s7 = inlined_call_operand.<no memory space> [shape: f32[1], index: 7, kind: input, shape index: {}]   ;;  %s1534_s8 = inlined_call_operand.hbm [shape: f32[2,8,32], index: 8, kind: output, shape index: {}]  }
   0x1   :  { %1553 = sst [smem:[#allocation22_spill]] %s1527_s1 }
   0x2   :  { %1554 = sst [smem:[#allocation23_spill]] %s1530_s4 }
   0x3   :  { %1555 = sst [smem:[#allocation24_spill]] %s1534_s8 }
   0x4   :  { %13 = sst [smem:[#allocation2]] %s1533_s7 }
   0x5   :  { %14 = vsyncpa [#allocation4], 0 }
   0x6   :  { %16 = vsyncpa [#allocation4 + $0x1], 0 }
   0x7   :  { %17 = vsyncpa [#allocation7], 0 }
   0x8   :  { %19 = vsyncpa [#allocation7 + $0x1], 0 }
   0x9   :  { %20 = vsyncpa [#allocation10], 0 }
   0xa   :  { %21 = vsyncpa [#allocation5], 0 }
   0xb   :  { %23 = vsyncpa [#allocation5 + $0x1], 0  ;;  %s1222_s29 = smov 0   ;;  %s1224_s30 = smov 0  }
   0xc   :  { %s1226_s9 = smov 0   ;;  %s1228_s10 = smov 0  }
   0xd LB: > { %1556 = sst [smem:[#allocation16_spill]] %s1150_s29  ;;  %s1243_s7 = sadd.s32 1, %s1162_s10   ;;  %s1162_s10 = sphi %s1228_s10, %s1588_s10   ;;  %s1158_s9 = sphi %s1226_s9, %s1592_s9   ;;  %s1154_s30 = sphi %s1224_s30, %s1591_s30   ;;  %s1150_s29 = sphi %s1222_s29, %s1590_s29  }
   0xe   : > { %1557 = sst [smem:[#allocation17_spill]] %s1162_s10  ;;  %s36_s11 = sadd.s32 1, %s1158_s9 }
   0xf   : > { %1558 = sst [smem:[#allocation18_spill]] %s1243_s7  ;;  %s33_s12 = ssub.s32 %s1162_s10, %s1243_s7 }
  0x10   : > { %p1535_p0 = scmp.ne.s32.totalorder %s1158_s9, %s1154_s30  ;;  %p34_p1 = scmp.eq.s32.totalorder %s33_s12, 0 }
  0x11   : > { %p44_p2 = scmp.eq.s32.totalorder %s1162_s10, 0  ;;  %p921_p4 = scmp.lt.s32.totalorder %s1162_s10, 2 }
  0x12   : > { %s1254_s13 = scalar_select %p34_p1, %s1158_s9, %s36_s11  }
  0x13   : > { %p45_p5 = por %p44_p2, %p1535_p0  ;;  %s1536_s14 = sand.u32 1, %s1158_s9  }
  0x14   : > { %1559 = sst [smem:[#allocation19_spill]] %s1254_s13  ;;  %s1262_s15 = sshll.u32 %s1536_s14, 3 }
  0x15   : > { %s1265_s16 = sshll.u32 %s1162_s10, 7  ;;  %p1267_p6 = pnand %p921_p4, %p45_p5 }
  0x16   : > { %s299_s18 = sand.u32 1, %s1162_s10   ;;  %s1561_s1 = sld [smem:[#allocation22_spill]] }
  0x17   : > { %s1560_s17 = scalar_select %p1267_p6, 1, 0 }
  0x18   : > { %s303_s22 = scalar_lea.vmem [#allocation6], %s1262_s15  ;;  %s1281_s24 = scalar_lea.sflag [#allocation7], %s299_s18 }
  0x19   : > { %s310_s23 = sshll.u32 %s303_s22, 4  ;;  %p1287_p8 = pneg %p1267_p6  ;;  %s1279_s23 = int_to_ptr.vmem [resolvable:$true] %s310_s23 }
  0x1b   : > { %s1562_s26 = scalar_select %p1287_p8, 1, 0 }
  0x1c   : > { %s1276_s21 = scalar_lea.hbm %s1561_s1, %s1265_s16  ;;  %s975_s11 = scalar_lea.hbm %s1561_s1, 256 }
  0x1d   : > { %s970_s25 = scalar_lea.hbm %s1276_s21, 128  ;;  %p976_p11 = scmp.lt.u32.totalorder %s1276_s21, %s1561_s1 }
  0x1e   : > { %p971_p7 = scmp.ne.s32.totalorder %s1276_s21, %s970_s25  ;;  %p977_p12 = scmp.lt.u32.totalorder %s975_s11, %s970_s25 }
  0x1f   : > { %p979_p1 = scmp.lt.u32.totalorder %s970_s25, %s1276_s21 }
  0x20   : > { %p973_p9 = pnand %p1287_p8, %p971_p7  ;;  %p978_p13 = por %p977_p12, %p976_p11 }
  0x22   : > { %p974_p10 = pneg %p973_p9  ;;  %p980_p2 = por %p979_p1, %p978_p13 }
  0x24   : > { %p981_p4 = pnand %p980_p2, %p974_p10 }
  0x26   : > { %984 = shalt.err (!%p981_p4)
}
  0x27   : > { %s985_s18 = scalar_lea.vmem %s1279_s23, 128  ;;  %s1164_s20 = smov [#allocation6]  }
  0x28   : > { %p986_p5 = scmp.ne.s32.totalorder %s1279_s23, %s985_s18  ;;  %s990_s22 = sshll.u32 %s1164_s20, 4  ;;  %s991_s22 = int_to_ptr.vmem [resolvable:$false] %s990_s22 }
  0x29   : > { %s992_s27 = scalar_lea.vmem %s991_s22, 256  ;;  %p993_p3 = scmp.lt.s32.totalorder %s1279_s23, %s991_s22 }
  0x2a   : > { %p988_p7 = pnand %p986_p5, %p1287_p8  ;;  %p994_p0 = scmp.lt.s32.totalorder %s992_s27, %s985_s18 }
  0x2c   : > { %p989_p9 = pneg %p988_p7  ;;  %p995_p11 = por %p994_p0, %p993_p3 }
  0x2e   : > { %p996_p12 = pnand %p995_p11, %p989_p9 }
  0x30   : > { %999 = shalt.err (!%p996_p12)
}
  0x31   : > { %912 = dma.hbm_to_vmem [thread:$0]  (!%p1267_p6), %s1276_s21, 128, %s1279_s23, %s1281_s24  }
  0x32   : > { %s1312_s25 = sadd.s32 4294967295, %s1162_s10   ;;  %s828_s28 = sadd.s32 4294967294, %s1162_s10  }
  0x33   : > { %p49_p0 = scmp.ne.s32.totalorder %s1154_s30, %s1150_s29  ;;  %p1543_p3 = scmp.eq.s32.totalorder %s1312_s25, 0 }
  0x34   : > { %p230_p10 = scmp.eq.s32.totalorder %s1312_s25, 1  ;;  %p236_p13 = scmp.eq.s32.totalorder %s828_s28, 1 }
  0x35   : > { %p1321_p1 = por %p1543_p3, %p49_p0  ;;  %p829_p2 = scmp.ge.s32.totalorder %s1162_s10, 1 }
  0x36   : > { %p1564_p4 = scmp.ne.s32.totalorder %s1158_s9, %s1154_s30  ;;  %p1333_p7 = por %p236_p13, %p49_p0 }
  0x37   : > { %s1563_s11 = scalar_select %p1321_p1, 1, 0 }
  0x38   : > { %p1329_p5 = por %p230_p10, %p1564_p4  ;;  %p243_p9 = scmp.lt.s32.totalorder %s1162_s10, 3 }
  0x39   : > { %s1567_s23 = scalar_select %p1333_p7, 1, 0 }
  0x3a   : > { %s1565_s21 = scalar_select %p1329_p5, 1, 0 }
  0x3b   : > { %1568 = sst [smem:[#allocation21_spill]] %s1567_s23  ;;  %p1338_p11 = pnand %p829_p2, %p243_p9 }
  0x3c   : > { %1566 = sst [smem:[#allocation20_spill]] %s1565_s21  ;;  %s1165_s19 = smov [#allocation9]  }
  0x3d   : > { %s1569_s12 = scalar_select %p1338_p11, 1, 0 }
  0x3e   : > { %s255_s18 = sshll.u32 %s1165_s19, 4  ;;  %p902_p12 = pneg %p1338_p11  ;;  %s1342_s18 = int_to_ptr.vmem [resolvable:$true] %s255_s18 }
  0x3f   : > { %s1350_s27 = scalar_lea.hbm %s1526_s0, %s1265_s16  ;;  %s285_s14 = scalar_lea.vmem [#allocation3], %s1262_s15 }
  0x40   : > { %p1354_p0 = pnand %p902_p12, %p1543_p3  ;;  %s292_s1 = sshll.u32 %s285_s14, 4  ;;  %s1359_s1 = int_to_ptr.vmem [resolvable:$true] %s292_s1 }
  0x41   : > { %s1365_s7 = scalar_lea.hbm %s1528_s2, %s1265_s16  ;;  %s1000_s20 = scalar_lea.hbm %s1529_s3, 512 }
  0x42   : > { %p1001_p10 = scmp.ne.s32.totalorder %s1529_s3, %s1000_s20  ;;  %p1002_p13 = pneg %p1354_p0 }
  0x43   : > { %p1007_p9 = scmp.lt.u32.totalorder %s1000_s20, %s1529_s3 }
  0x44   : > { %p1003_p2 = pnand %p1002_p13, %p1001_p10 }
  0x46   : > { %p1004_p4 = pneg %p1003_p2 }
  0x48   : > { %p1009_p12 = pnand %p1007_p9, %p1004_p4 }
  0x4a   : > { %1012 = shalt.err (!%p1009_p12)
}
  0x4b   : > { %s1013_s13 = scalar_lea.vmem %s1342_s18, 512  ;;  %p1021_p1 = scmp.lt.s32.totalorder %s1342_s18, %s1342_s18 }
  0x4c   : > { %p1014_p3 = scmp.ne.s32.totalorder %s1342_s18, %s1013_s13  ;;  %p1022_p11 = scmp.lt.s32.totalorder %s1013_s13, %s1013_s13 }
  0x4e   : > { %p1016_p7 = pnand %p1014_p3, %p1002_p13  ;;  %p1023_p6 = por %p1022_p11, %p1021_p1 }
  0x50   : > { %p1017_p5 = pneg %p1016_p7 }
  0x52   : > { %p1024_p8 = pnand %p1023_p6, %p1017_p5 }
  0x54   : > { %1027 = shalt.err (!%p1024_p8)
}
  0x55   : > { %s1166_s29 = smov 128   ;;  %s1167_s8 = smov 8  }
  0x56   : > { %905 = dma.hbm_to_vmem [thread:$0]  (!%p1354_p0), %s1529_s3, 512, %s1342_s18, [#allocation10], %s1166_s29, %s1166_s29, %s1167_s8  }
  0x57   : > { %s1571_s23 = sand.u32 1, %s1158_s9   ;;  %s1028_s20 = scalar_lea.hbm %s1350_s27, 128 }
  0x58   : > { %s282_s19 = scalar_lea.sflag [#allocation4], %s1571_s23  ;;  %p1029_p6 = scmp.ne.s32.totalorder %s1350_s27, %s1028_s20 }
  0x59   : > { %p1572_p8 = scmp.ne.s32.totalorder %s1562_s26, 0  ;;  %s1033_s13 = scalar_lea.hbm %s1526_s0, 256 }
  0x5a   : > { %p1034_p5 = scmp.lt.u32.totalorder %s1350_s27, %s1526_s0  ;;  %p1035_p7 = scmp.lt.u32.totalorder %s1033_s13, %s1028_s20 }
  0x5b   : > { %p1031_p3 = pnand %p1029_p6, %p1572_p8  ;;  %p1037_p10 = scmp.lt.u32.totalorder %s1028_s20, %s1350_s27 }
  0x5c   : > { %p1036_p11 = por %p1035_p7, %p1034_p5 }
  0x5d   : > { %p1032_p1 = pneg %p1031_p3 }
  0x5e   : > { %p1038_p13 = por %p1037_p10, %p1036_p11 }
  0x60   : > { %p1039_p0 = pnand %p1038_p13, %p1032_p1 }
  0x62   : > { %1042 = shalt.err (!%p1039_p0)
}
  0x63   : > { %s1043_s18 = scalar_lea.vmem %s1359_s1, 128  ;;  %s1168_s28 = smov [#allocation3]  }
  0x64   : > { %p1044_p2 = scmp.ne.s32.totalorder %s1359_s1, %s1043_s18  ;;  %s1048_s29 = sshll.u32 %s1168_s28, 4  ;;  %s1049_s29 = int_to_ptr.vmem [resolvable:$false] %s1048_s29 }
  0x65   : > { %s1050_s4 = scalar_lea.vmem %s1049_s29, 256  ;;  %p1051_p12 = scmp.lt.s32.totalorder %s1359_s1, %s1049_s29 }
  0x66   : > { %p1046_p4 = pnand %p1044_p2, %p1572_p8  ;;  %p1052_p6 = scmp.lt.s32.totalorder %s1050_s4, %s1043_s18 }
  0x68   : > { %p1047_p9 = pneg %p1046_p4  ;;  %p1053_p3 = por %p1052_p6, %p1051_p12 }
  0x6a   : > { %p1054_p5 = pnand %p1053_p3, %p1047_p9 }
  0x6c   : > { %1057 = shalt.err (!%p1054_p5)
}
  0x6d   : > { %p1573_p1 = scmp.ne.s32.totalorder %s1560_s17, 0  ;;  %s321_s21 = scalar_lea.vmem [#allocation8], %s1262_s15 }
  0x6e   : > { %s328_s8 = sshll.u32 %s321_s21, 4  ;;  %s1058_s10 = scalar_lea.hbm %s1365_s7, 128  ;;  %s329_s8 = int_to_ptr.vmem [resolvable:$true] %s328_s8 }
  0x6f   : > { %909 = dma.hbm_to_vmem [thread:$0]  (!%p1573_p1), %s1350_s27, 128, %s1359_s1, %s282_s19  }
  0x70   : > { %p1059_p7 = scmp.ne.s32.totalorder %s1365_s7, %s1058_s10  ;;  %s1063_s20 = scalar_lea.hbm %s1528_s2, 256 }
  0x71   : > { %p1064_p13 = scmp.lt.u32.totalorder %s1365_s7, %s1528_s2  ;;  %p1065_p0 = scmp.lt.u32.totalorder %s1063_s20, %s1058_s10 }
  0x72   : > { %p1061_p11 = pnand %p1059_p7, %p1572_p8  ;;  %p1067_p4 = scmp.lt.u32.totalorder %s1058_s10, %s1365_s7 }
  0x73   : > { %p1066_p2 = por %p1065_p0, %p1064_p13 }
  0x74   : > { %p1062_p10 = pneg %p1061_p11 }
  0x75   : > { %p1068_p9 = por %p1067_p4, %p1066_p2 }
  0x77   : > { %p1069_p12 = pnand %p1068_p9, %p1062_p10 }
  0x79   : > { %1072 = shalt.err (!%p1069_p12)
}
  0x7a   : > { %s1073_s1 = scalar_lea.vmem %s329_s8, 128  ;;  %s1169_s15 = smov [#allocation8]  }
  0x7b   : > { %p1074_p6 = scmp.ne.s32.totalorder %s329_s8, %s1073_s1  ;;  %s1078_s27 = sshll.u32 %s1169_s15, 4  ;;  %s1079_s27 = int_to_ptr.vmem [resolvable:$false] %s1078_s27 }
  0x7c   : > { %s1080_s19 = scalar_lea.vmem %s1079_s27, 256  ;;  %p1081_p7 = scmp.lt.s32.totalorder %s329_s8, %s1079_s27 }
  0x7d   : > { %p1076_p3 = pnand %p1074_p6, %p1572_p8  ;;  %p1082_p11 = scmp.lt.s32.totalorder %s1080_s19, %s1073_s1 }
  0x7f   : > { %p1077_p5 = pneg %p1076_p3  ;;  %p1083_p1 = por %p1082_p11, %p1081_p7 }
  0x81   : > { %p1084_p0 = pnand %p1083_p1, %p1077_p5 }
  0x83   : > { %1087 = shalt.err (!%p1084_p0)
}
  0x84   : > { %p1574_p13 = scmp.ne.s32.totalorder %s1560_s17, 0  ;;  %p1575_p10 = scmp.ne.s32.totalorder %s1569_s12, 0 }
  0x85   : > { %s1433_s26 = sand.u32 (!%p1575_p10), 1, %s1154_s30   ;;  %p1576_p8 = scmp.ne.s32.totalorder (!%p1575_p10), %s1563_s11, 0 }
  0x86   : > { %915 = dma.hbm_to_vmem [thread:$0]  (!%p1574_p13), %s1365_s7, 128, %s329_s8, %s1281_s24  }
  0x87   : > { %337 = sbr.rel (%p1575_p10) target bundleno = 685 (0x2ad), region = 52  ;;  %s1436_s13 = sshll.u32 (!%p1575_p10), %s1433_s26, 3 }
  0x88   : > { %s340_s18 = scalar_lea.sflag (!%p1575_p10), [#allocation4], %s1433_s26  ;;  %s343_s28 = scalar_lea.vmem (!%p1575_p10), [#allocation3], %s1436_s13 }
  0x8e   : > { %1133 = dma.done.wait (%p1576_p8), %s340_s18, 128  }
  0x8f   : > { %1135 = vsyncadd (%p1576_p8), %s340_s18, 4294967168  ;;  %s348_s7 = sand.u32 1, %s1312_s25   ;;  %s352_s24 = scalar_lea.vmem [#allocation6], %s1436_s13 }
  0x90   : > { %s349_s17 = scalar_lea.sflag [#allocation7], %s348_s7 }
  0x91   : > { %1137 = dma.done.wait (%p1576_p8), %s349_s17, 256  }
  0x92   : > { %1139 = vsyncadd (%p1576_p8), %s349_s17, 4294967040  ;;  %s361_s12 = scalar_lea.vmem [#allocation8], %s1436_s13  ;;  %p1577_p1 = scmp.eq.s32.totalorder %s1312_s25, 0 }
  0x94   : > { %1141 = dma.done.wait (%p1577_p1), [#allocation10], 512   ;;  %p1578_p2 = pmov %p1577_p1 }
  0x95   : > { %v1170_v0 = vmov 0.0|0.0   ;;  %vm1171_vm0 = vmmov 0   ;;  %v1172_v1 = vmov 0.0   ;;  %v409_v2 = vld [vmem:[#allocation9] sm:$0xff]  ;;  %v410_v3 = vld [vmem:[#allocation9 + $0x8] sm:$0xff]  ;;  %vm420_vm1 = vcmask 261120  }
  0x96   : > { %1143 = vsyncadd (%p1578_p2), [#allocation10], 4294966784  ;;  %884 = vmatprep.subr.bf16.mxu0 %v1170_v0  ;;  %871 = vmatprep.mubr.msk.f32.mxu0 %vm1171_vm0, %v1172_v1  ;;  %v495_v4 = vld [vmem:[%s352_s24] sm:$0xff]  ;;  %v885_v5 = vpack.c.bf16 %v410_v3, %v409_v2  ;;  %v846_v6 = vld [vmem:[%s1531_s5] ss:$0 sm:$0xff]  ;;  %vm532_vm2 = vcmask 64512   ;;  %v526_v25 = vlaneseq }
  0x97   : > { %874 = vmatprep.subr.mxu1 %v1172_v1  ;;  %876 = vmatprep.mubr.msk.f32.mxu1 %vm1171_vm0, %v1172_v1  ;;  %v411_v7 = vld [vmem:[#allocation9 + $0x10] sm:$0xff]  ;;  %v412_v8 = vld [vmem:[#allocation9 + $0x18] sm:$0xff]  ;;  %v503_v9 = vmul.f32 %v846_v6, %v495_v4  ;;  %s507_s8 = sld [smem:[#allocation2]]  ;;  %s1579_s23 = sld [smem:[#allocation23_spill]] }
  0x98   : > { %886 = vmatpush3.bf16.msra.mxu0 %v885_v5  ;;  %v888_v10 = vpack.c.bf16 %v412_v8, %v411_v7  ;;  %v408_v12 = vld [vmem:[%s343_s28] sm:$0xff]  ;;  %v527_v26 = vand.u32 127, %v526_v25  ;;  %v529_v27 = vshrl.u32 %v526_v25, 7  ;;  %s1580_s20 = sld [smem:[#allocation20_spill]]  ;;  %s851_s22 = sshll.u32 %s1312_s25, 7 }
  0x99   : > { %v504_v11 = vsel %vm420_vm1, %v503_v9, 0.0  ;;  %887 = vmatprep.subr.bf16.mxu0 %v1170_v0  ;;  %v524_v13 = vld [vmem:[%s1532_s6] sm:$0xff]  ;;  %s407_s14 = scalar_lea.vmem [#allocation11], %s1436_s13  ;;  %s1581_s19 = sld [smem:[#allocation24_spill]] }
  0x9a   : > { %505 = vadd.xlane.f32.xlu0 %v504_v11  ;;  %875 = vmatpush3.xpose.msk.msra.mxu1 %vm532_vm2, %v524_v13  ;;  %v530_v28 = vsub.s32 %v527_v26, %v529_v27  ;;  %v609_v35 = vld [vmem:[%s361_s12] sm:$0xff]  ;;  %v684_v47 = vsub.s32 0, %v529_v27  ;;  %s705_s1 = sshll.u32 %s407_s14, 4  ;;  %s692_s28 = scalar_lea.sflag [#allocation5], %s1433_s26  ;;  %s1483_s1 = int_to_ptr.vmem [resolvable:$true] %s705_s1 }
  0x9b   : > { %879 = vmatprep.subr.mxu1 %v1172_v1  ;;  %s1088_s7 = scalar_lea.vmem %s1483_s1, 128  ;;  %s1173_s25 = smov [#allocation11]  }
  0x9c   : > { %889 = vmatpush3.bf16.msra.mxu0 %v888_v10  ;;  %p1089_p4 = scmp.ne.s32.totalorder %s1483_s1, %s1088_s7  ;;  %s1092_s13 = sshll.u32 %s1173_s25, 4  ;;  %s1093_s13 = int_to_ptr.vmem [resolvable:$false] %s1092_s13 }
  0x9d   : > { %v508_v14 = vstv %s507_s8  ;;  %v844_v31 = vld [vmem:[%s1579_s23] ss:$0 sm:$0xff]  ;;  %s1094_s17 = scalar_lea.vmem %s1093_s13, 256  ;;  %p1095_p3 = scmp.lt.s32.totalorder %s1483_s1, %s1093_s13 }
  0x9e   : > { %p1582_p9 = scmp.ne.s32.totalorder %s1580_s20, 0  ;;  %p1096_p5 = scmp.lt.s32.totalorder %s1094_s17, %s1088_s7 }
  0x9f   : > { %872 = vmatmul.mubr.msk.f32.vlgmr.msra.gmra.mrb[0].mxu0 %vm420_vm1, %v408_v12  ;;  %s1481_s18 = scalar_lea.hbm %s1581_s19, %s851_s22 }
  0xa0   : > { %p1090_p12 = pnand %p1089_p4, %p1582_p9  ;;  %p1097_p7 = por %p1096_p5, %p1095_p3 }
  0xa2   : > { %p1091_p6 = pneg %p1090_p12 }
  0xa4   : > { %p1098_p11 = pnand %p1097_p7, %p1091_p6 }
 0x127   : > { %v506_v15 = vpop.xlane.xlu0 %505 }
 0x128   : > { %v509_v16 = vadd.f32 %v508_v14, %v506_v15 }
 0x12a   : > { %v510_v17 = vrot.slane %v509_v16, 4 }
 0x12c   : > { %v511_v18 = vmax.f32 %v509_v16, %v510_v17 }
 0x12e   : > { %v512_v19 = vrot.slane %v511_v18, 2 }
 0x130   : > { %v513_v20 = vmax.f32 %v511_v18, %v512_v19 }
 0x132   : > { %v514_v21 = vrot.slane %v513_v20, 1 }
 0x134   : > { %v515_v22 = vmax.f32 %v513_v20, %v514_v21 }
 0x136   : > { %v516_v23 = vsub.f32 %v509_v16, %v515_v22  ;;  %v519_v39 = vsub.f32 0.0, %v515_v22 }
 0x138   : > { %v517_v24 = vmul.f32 1.442695, %v516_v23  ;;  %v520_v40 = vmin.f32 %v519_v39, 80.0 }
 0x13a   : > { %962 = vpow2.f32 %v517_v24  ;;  %v521_v41 = vmul.f32 1.442695, %v520_v40 }
 0x144   : > { %v963_v29 = vpop.eup %962 }
 0x145   : > { %v531_v30 = vrot.slane %v963_v29, %v530_v28 }
 0x147   : > { %877 = vmatmul.mubr.msk.f32.vlgmr.msra.gmra.mrb[0].mxu1 %vm532_vm2, %v531_v30 }
 0x148   : > { %881 = vmatprep.mubr.msk.f32.mxu1 %vm1171_vm0, %v1172_v1 }
 0x172   : > { %v490_v32 = vpop.f32.mrb[0].mxu0 }
 0x173   : > { %v491_v33 = vadd.f32 %v844_v31, %v490_v32  ;;  %v873_v34 = vpop.f32.mrb[1].mxu0 }
 0x175   : > { %964 = vtanh.f32 %v491_v33 }
 0x176   : > { %966 = vpow2.f32 %v521_v41 }
 0x17f   : > { %v965_v36 = vpop.eup %964 }
 0x180   : > { %v610_v37 = vmul.f32 %v965_v36, %v609_v35  ;;  %v967_v42 = vpop.eup %966 }
 0x181   : > { %v523_v43 = vmul.f32 1e-10, %v967_v42 }
 0x182   : > { %v611_v38 = vmul.f32 %v963_v29, %v610_v37 }
 0x184   : > { %880 = vmatpush3.msra.mxu1 %v611_v38 }
 0x185   : > { %882 = vmatmul.mubr.msk.f32.vlgmr.msra.gmra.mrb[2].mxu1 %vm532_vm2, %v524_v13 }
 0x21a   : > { %v604_v44 = vpop.f32.mrb[0].mxu1 }
 0x21b   : > { %v605_v45 = vadd.f32 %v604_v44, %v523_v43  ;;  %v878_v46 = vpop.f32.mrb[1].mxu1 }
 0x21d   : > { %968 = vrcp.f32 %v605_v45 }
 0x227   : > { %v969_v48 = vpop.eup %968 }
 0x228   : > { %v685_v49 = vrot.slane %v969_v48, %v684_v47 }
 0x22a   : > { %687 = vbcast.lane.b32.xlu0 %v685_v49, 256 }
 0x258   : > { %v678_v50 = vpop.f32.mrb[2].mxu1 }
 0x259   : > { %v883_v51 = vpop.f32.mrb[3].mxu1 }
 0x29c   : > { %v688_v52 = vpop.permute.xlu0 %687 }
 0x29d   : > { %v689_v53 = vmul.f32 %v688_v52, %v678_v50 }
 0x29f   : > { %690 = vst.msk [vmem:[%s407_s14] sm:$0xff] %vm420_vm1, %v689_v53 }
 0x2a0   : > { %1101 = shalt.err (!%p1098_p11)
}
 0x2a1   : > { %s1102_s26 = scalar_lea.hbm %s1481_s18, 128  ;;  %s1106_s11 = scalar_lea.hbm %s1581_s19, 256 }
 0x2a2   : > { %p1103_p0 = scmp.ne.s32.totalorder %s1481_s18, %s1102_s26  ;;  %p1107_p8 = scmp.lt.u32.totalorder %s1481_s18, %s1581_s19 }
 0x2a3   : > { %p1108_p1 = scmp.lt.u32.totalorder %s1106_s11, %s1102_s26  ;;  %p1110_p4 = scmp.lt.u32.totalorder %s1102_s26, %s1481_s18 }
 0x2a4   : > { %p1104_p13 = pnand %p1103_p0, %p1582_p9 }
 0x2a5   : > { %p1109_p2 = por %p1108_p1, %p1107_p8 }
 0x2a6   : > { %p1105_p10 = pneg %p1104_p13 }
 0x2a7   : > { %p1111_p12 = por %p1110_p4, %p1109_p2 }
 0x2a9   : > { %p1112_p6 = pnand %p1111_p12, %p1105_p10 }
 0x2ab   : > { %1115 = shalt.err (!%p1112_p6)
}
 0x2ac   : > { %900 = dma.vmem_to_hbm [thread:$0]  (%p1582_p9), %s1483_s1, 128, %s1481_s18, %s692_s28  }
 0x2ad PF: > { %s1583_s21 = sld [smem:[#allocation16_spill]]  ;;  %s1584_s8 = sld [smem:[#allocation21_spill]] }
 0x2ae   : > { %s1585_s10 = sld [smem:[#allocation17_spill]] }
 0x2b3   : > { %s717_s16 = sand.u32 1, %s1583_s21   ;;  %p1586_p3 = scmp.ne.s32.totalorder %s1584_s8, 0 }
 0x2b4   : > { %p1587_p5 = scmp.ge.s32.totalorder %s1585_s10, 2  ;;  %s718_s23 = scalar_lea.sflag [#allocation5], %s717_s16 }
 0x2b6   : > { %p917_p7 = pnand %p1587_p5, %p1586_p3 }
 0x2b8   : > { %1145 = dma.done.wait (!%p917_p7), %s718_s23, 128  }
 0x2b9   : > { %1147 = vsyncadd (!%p917_p7), %s718_s23, 4294967168  ;;  %s1588_s10 = sld [smem:[#allocation18_spill]]  ;;  %s1589_s22 = sld [smem:[#allocation19_spill]] }
 0x2ba   : > { %s1590_s29 = smov %s1154_s30  ;;  %s1591_s30 = smov %s1158_s9 }
 0x2bf   : > { %p26_p11 = scmp.ge.s32.totalorder %s1588_s10, 4   ;;  %s1592_s9 = smov %s1589_s22 }
 0x2c1   :  { %28 = sbr.rel (!%p26_p11) target bundleno = 13 (0xd), region = 125 }
 0x2c8   :  { %723 = vsyncpa [#allocation4], 1 }
 0x2c9   :  { %725 = vsyncpa [#allocation4 + $0x1], 1 }
 0x2ca   :  { %726 = vsyncpa [#allocation7], 1 }
 0x2cb   :  { %728 = vsyncpa [#allocation7 + $0x1], 1 }
 0x2cc   :  { %729 = vsyncpa [#allocation10], 1 }
 0x2cd   :  { %730 = vsyncpa [#allocation5], 1 }
 0x2ce   :  { %732 = vsyncpa [#allocation5 + $0x1], 1 }

</bundles_post_ra>
